<compile_context>
chip_gen: v6e
topology: v6e:2x2x1
jax: 0.10.0
libtpu: 0.0.40
codegen_flags: <defaults>
</compile_context>

<pallas_src>
import jax
import jax.numpy as jnp
from jax.experimental import pallas as pl
from jax.experimental.pallas import tpu as pltpu


def _poison_hbm_copy_kernel(poison_hbm_ref, out_hbm_ref, sem):
    """One long contiguous HBM->HBM DMA of the whole parameter batch."""
    cp = pltpu.make_async_copy(poison_hbm_ref, out_hbm_ref, sem)
    cp.start()
    cp.wait()


def _materialized_copy(poison: jax.Array) -> jax.Array:
    """Single-DMA materialized copy of `poison` (no VMEM bounce, no grid)."""
    return pl.pallas_call(
        _poison_hbm_copy_kernel,
        out_shape=jax.ShapeDtypeStruct(poison.shape, poison.dtype),
        in_specs=[pl.BlockSpec(memory_space=pl.ANY)],
        out_specs=pl.BlockSpec(memory_space=pl.ANY),
        scratch_shapes=[pltpu.SemaphoreType.DMA(())],
    )(poison)


def poison_batch_forward(poison: jax.Array, *, materialize: bool = False) -> jax.Array:
    """Pallas implementation of PoisonBatch.forward().

    Args:
      poison: the parameter batch, shape (N, C, H, W), any dtype.
      materialize: if True, return a freshly materialized copy produced by a
        single HBM->HBM DMA kernel; if False (default), return `poison`
        directly -- the true identity, zero HBM traffic, matching the PyTorch
        module which just returns `self.poison`.

    Returns:
      Array identical to `poison`.
    """
    if not materialize:
        # Identity: launching any kernel here would be pure wasted HBM traffic.
        return poison
    return _materialized_copy(poison)


if __name__ == "__main__":
    # Deterministic "base_list" construction: N base images of shape (C, H, W),
    # stacked along axis 0 (mirrors torch.stack(base_list, 0)).
    key = jax.random.PRNGKey(0)
    N, C, H, W = 2, 4, 16, 16
    keys = jax.random.split(key, N)
    base_list = [jax.random.uniform(k, (C, H, W), dtype=jnp.float32) for k in keys]
    poison_param = jnp.stack(base_list, axis=0)  # the nn.Parameter equivalent

    # Default forward path: pure identity, no kernel launch.
    out_identity = poison_batch_forward(poison_param)
    out_identity = jax.block_until_ready(out_identity)
    assert out_identity.shape == (N, C, H, W)
    assert out_identity.dtype == poison_param.dtype
    assert bool(jnp.array_equal(out_identity, poison_param))

    # Exercise the Pallas kernel once: materialized copy via one HBM->HBM DMA.
    out_copy = poison_batch_forward(poison_param, materialize=True)
    out_copy = jax.block_until_ready(out_copy)
    assert out_copy.shape == (N, C, H, W)
    assert out_copy.dtype == poison_param.dtype
    assert bool(jnp.array_equal(out_copy, poison_param))

    print("KERNEL_OK")
</pallas_src>

<mosaic_0001>
module attributes {stable_mosaic.version = 11 : i64} {
  func.func @_poison_hbm_copy_kernel(%arg0: memref<2x4x16x16xf32, #tpu.memory_space<any>>, %arg1: memref<2x4x16x16xf32, #tpu.memory_space<any>>, %arg2: memref<!tpu.dma_semaphore, #tpu.memory_space<semaphore_mem>>) attributes {dimension_semantics = [], scalar_prefetch = 0 : i64, scratch_operands = 1 : i64, tpu.core_type = #tpu.core_type<tc>} {
    tpu.enqueue_dma source(%arg0 : memref<2x4x16x16xf32, #tpu.memory_space<any>>) target(%arg1 : memref<2x4x16x16xf32, #tpu.memory_space<any>>) target_semaphore(%arg2 : memref<!tpu.dma_semaphore, #tpu.memory_space<semaphore_mem>>)
    tpu.wait_dma2 semaphore(%arg2 : memref<!tpu.dma_semaphore, #tpu.memory_space<semaphore_mem>>) src(%arg0 : memref<2x4x16x16xf32, #tpu.memory_space<any>>) dst(%arg1 : memref<2x4x16x16xf32, #tpu.memory_space<any>>)
    return
  }
}

</mosaic_0001>

<bundles_post_ra>
// kernel: tpu_custom_call.1
= control target key start
LH: loop header
LB: loop body
LE: loop exit
PB: predicated region body
PF: predicated region fallthrough
CT: control target
= control target key end

     0   :  { %s30_s6 = smov [#allocation2]   ;;  %s31_s7 = smov 131072   ;;  %s49_s0 = inlined_call_operand.hbm [shape: f32[2,4,16,16], index: 0, kind: input, shape index: {}]   ;;  %s50_s1 = inlined_call_operand.hbm [shape: f32[2,4,16,16], index: 1, kind: output, shape index: {}]  }
   0x1   :  { %s32_s8 = smov 0  }
   0x2   :  { %12 = dma.general %s49_s0, 2048, %s50_s1, %s30_s6, %s31_s7, [#allocation4], %s32_s8, 0  }
   0x3   :  { %28 = dma.done.wait [#allocation2], 2048 }
   0x4   :  { %29 = vsyncadd [#allocation2], 4294965248 }
   0x5   :  { %18 = vsyncmov [#allocation2] }
   0x8   :  { %s19_s13 = vpop.sfrf %18 }
   0x9   :  { %p24_p0 = scmp.ne.s32.totalorder %s19_s13, 0 }
   0xb   :  { %23 = shalt.err (%p24_p0)  }

</bundles_post_ra>
